<compile_context>
chip_gen: v5e
topology: v5e:2x2
jax: 0.10.0
libtpu: 0.0.40
codegen_flags: <defaults>
</compile_context>

<pallas_src>
import jax
import jax.numpy as jnp
from jax import lax
from jax.experimental import pallas as pl
from jax.experimental.pallas import tpu as pltpu


def _rup(n, m):
    return ((n + m - 1) // m) * m


def _mlp_kernel(x_ref, w1_ref, w2_ref, w3_ref, o_ref):
    # x_ref:  (TB, FI)  bf16
    # w1_ref: (F1, FI), w2_ref: (F2, F1), w3_ref: (FO, F2)   bf16, torch (out, in) layout
    # o_ref:  (TB, FO)  f32
    dn = (((1,), (1,)), ((), ()))  # contract last dim of x with last dim of W  ->  x @ W.T
    x = x_ref[...]
    h1 = lax.dot_general(x, w1_ref[...], dn, preferred_element_type=jnp.float32)
    h1 = jnp.maximum(h1, 0.0).astype(jnp.bfloat16)          # ReLU in f32, cast for next MXU pass
    h2 = lax.dot_general(h1, w2_ref[...], dn, preferred_element_type=jnp.float32)
    h2 = jnp.maximum(h2, 0.0).astype(jnp.bfloat16)
    out = lax.dot_general(h2, w3_ref[...], dn, preferred_element_type=jnp.float32)
    o_ref[...] = out.astype(o_ref.dtype)


def prepare_weights(w1, w2, w3):
    """One-time (outside the hot path) weight prep: bf16 cast + pad feature dims to 128.

    Keeps the torch (out_features, in_features) layout -- no transposes are materialized.
    """
    def pad_cast(w):
        o, i = w.shape
        op, ip = _rup(o, 128), _rup(i, 128)
        wb = w.astype(jnp.bfloat16)
        if (op, ip) != (o, i):
            wb = jnp.pad(wb, ((0, op - o), (0, ip - i)))
        return wb

    return pad_cast(w1), pad_cast(w2), pad_cast(w3)


def simple_mlp_forward(x, w1p, w2p, w3p, fo, *, tb=256):
    """x: (B, fi) f32; w*p: padded bf16 weights from prepare_weights; fo: true output width."""
    B, fi = x.shape
    F1, FI = w1p.shape
    F2, _ = w2p.shape
    FO, _ = w3p.shape

    # Batch tile: multiple of 8 sublanes, capped at the (padded) batch size.
    tb = min(tb, _rup(B, 8))
    Bp = _rup(B, tb)

    xb = x.astype(jnp.bfloat16)
    if (Bp, FI) != (B, fi):
        xb = jnp.pad(xb, ((0, Bp - B), (0, FI - fi)))

    grid = (pl.cdiv(Bp, tb),)

    out_padded = pl.pallas_call(
        _mlp_kernel,
        out_shape=jax.ShapeDtypeStruct((Bp, FO), jnp.float32),
        grid_spec=pl.GridSpec(
            grid=grid,
            in_specs=[
                pl.BlockSpec((tb, FI), lambda i: (i, 0)),   # batch-tiled activations (double-buffered)
                pl.BlockSpec((F1, FI), lambda i: (0, 0)),   # weights: same block every step -> VMEM-resident
                pl.BlockSpec((F2, F1), lambda i: (0, 0)),
                pl.BlockSpec((FO, F2), lambda i: (0, 0)),
            ],
            out_specs=pl.BlockSpec((tb, FO), lambda i: (i, 0)),
        ),
        compiler_params=pltpu.CompilerParams(
            dimension_semantics=("parallel",),              # shard batch tiles across v7x's 2 TCs
            vmem_limit_bytes=32 * 1024 * 1024,              # fits v7x scoped default; plenty here
        ),
    )(xb, w1p, w2p, w3p)

    return out_padded[:B, :fo]


def reference_forward_bf16(x, w1, w2, w3):
    """Pure-JAX reference mimicking the kernel's bf16-in / f32-accumulate math."""
    xb = x.astype(jnp.bfloat16)
    w1b, w2b, w3b = (w.astype(jnp.bfloat16) for w in (w1, w2, w3))
    h = jnp.dot(xb, w1b.T, preferred_element_type=jnp.float32)
    h = jnp.maximum(h, 0.0).astype(jnp.bfloat16)
    h = jnp.dot(h, w2b.T, preferred_element_type=jnp.float32)
    h = jnp.maximum(h, 0.0).astype(jnp.bfloat16)
    return jnp.dot(h, w3b.T, preferred_element_type=jnp.float32)


def reference_forward_f32(x, w1, w2, w3):
    h = jnp.maximum(x @ w1.T, 0.0)
    h = jnp.maximum(h @ w2.T, 0.0)
    return h @ w3.T


if __name__ == "__main__":
    fi, f1, f2, fo = 16, 32, 16, 16
    batch = 8

    key = jax.random.PRNGKey(0)
    kx, k1, k2, k3 = jax.random.split(key, 4)

    x = jax.random.normal(kx, (batch, fi), dtype=jnp.float32)
    w1 = jax.random.uniform(k1, (f1, fi), minval=-1.0 / fi**0.5, maxval=1.0 / fi**0.5,
                            dtype=jnp.float32)
    w2 = jax.random.uniform(k2, (f2, f1), minval=-1.0 / f1**0.5, maxval=1.0 / f1**0.5,
                            dtype=jnp.float32)
    w3 = jax.random.uniform(k3, (fo, f2), minval=-1.0 / f2**0.5, maxval=1.0 / f2**0.5,
                            dtype=jnp.float32)

    # TODO(synk): `_input_div` in-place pre-scaling is only active when the calib
    # harness attaches that attribute; the bare module has none, so it is a no-op here.

    # One-time weight prep (parameter-load time, not the per-call hot path).
    w1p, w2p, w3p = prepare_weights(w1, w2, w3)

    out = simple_mlp_forward(x, w1p, w2p, w3p, fo)
    out = jax.block_until_ready(out)

    ref_bf16 = reference_forward_bf16(x, w1, w2, w3)
    ref_f32 = reference_forward_f32(x, w1, w2, w3)

    assert out.shape == (batch, fo)
    # Tight check vs a reference using the same bf16-in/f32-acc math...
    assert jnp.allclose(out, ref_bf16, atol=1e-2, rtol=1e-2), "mismatch vs bf16 reference"
    # ...and a looser sanity check vs the pure-f32 reference (bf16 rounding tolerance).
    assert jnp.allclose(out, ref_f32, atol=7e-2, rtol=7e-2), "mismatch vs f32 reference"

    print("KERNEL_OK")
</pallas_src>

<mosaic_0001>
module attributes {stable_mosaic.version = 11 : i64} {
  func.func @_mlp_kernel(%arg0: i32, %arg1: memref<8x128xbf16, #tpu.memory_space<vmem>>, %arg2: memref<128x128xbf16, #tpu.memory_space<vmem>>, %arg3: memref<128x128xbf16, #tpu.memory_space<vmem>>, %arg4: memref<128x128xbf16, #tpu.memory_space<vmem>>, %arg5: memref<8x128xf32, #tpu.memory_space<vmem>>) attributes {dimension_semantics = [#tpu.dimension_semantics<parallel>], iteration_bounds = array<i64: 1>, scalar_prefetch = 0 : i64, scratch_operands = 0 : i64, tpu.core_type = #tpu.core_type<tc>, window_params = [{transform_indices = @transform_0, window_bounds = array<i64: 8, 128>}, {pipeline_mode = #tpu.pipeline_mode<synchronous>, transform_indices = @transform_1, window_bounds = array<i64: 128, 128>}, {pipeline_mode = #tpu.pipeline_mode<synchronous>, transform_indices = @transform_2, window_bounds = array<i64: 128, 128>}, {pipeline_mode = #tpu.pipeline_mode<synchronous>, transform_indices = @transform_3, window_bounds = array<i64: 128, 128>}, {transform_indices = @transform_4, window_bounds = array<i64: 8, 128>}]} {
    %c0 = arith.constant 0 : index
    %c0_0 = arith.constant 0 : index
    %0 = vector.load %arg1[%c0, %c0_0] : memref<8x128xbf16, #tpu.memory_space<vmem>>, vector<8x128xbf16>
    %c0_1 = arith.constant 0 : index
    %c0_2 = arith.constant 0 : index
    %1 = vector.load %arg2[%c0_1, %c0_2] : memref<128x128xbf16, #tpu.memory_space<vmem>>, vector<128x128xbf16>
    %cst = arith.constant dense<0.000000e+00> : vector<8x128xf32>
    %2 = tpu.matmul %0, %1, %cst {dimension_numbers = #tpu.dot_dimension_numbers<[1], [1], [0], [0], [0, 0, 1, 0], [], []>} : vector<8x128xbf16>, vector<128x128xbf16>, vector<8x128xf32> -> vector<8x128xf32>
    %cst_3 = arith.constant 0.000000e+00 : f32
    %3 = vector.broadcast %cst_3 : f32 to vector<8x128xf32>
    %4 = arith.maximumf %2, %3 : vector<8x128xf32>
    %5 = arith.truncf %4 : vector<8x128xf32> to vector<8x128xbf16>
    %c0_4 = arith.constant 0 : index
    %c0_5 = arith.constant 0 : index
    %6 = vector.load %arg3[%c0_4, %c0_5] : memref<128x128xbf16, #tpu.memory_space<vmem>>, vector<128x128xbf16>
    %cst_6 = arith.constant dense<0.000000e+00> : vector<8x128xf32>
    %7 = tpu.matmul %5, %6, %cst_6 {dimension_numbers = #tpu.dot_dimension_numbers<[1], [1], [0], [0], [0, 0, 1, 0], [], []>} : vector<8x128xbf16>, vector<128x128xbf16>, vector<8x128xf32> -> vector<8x128xf32>
    %cst_7 = arith.constant 0.000000e+00 : f32
    %8 = vector.broadcast %cst_7 : f32 to vector<8x128xf32>
    %9 = arith.maximumf %7, %8 : vector<8x128xf32>
    %10 = arith.truncf %9 : vector<8x128xf32> to vector<8x128xbf16>
    %c0_8 = arith.constant 0 : index
    %c0_9 = arith.constant 0 : index
    %11 = vector.load %arg4[%c0_8, %c0_9] : memref<128x128xbf16, #tpu.memory_space<vmem>>, vector<128x128xbf16>
    %cst_10 = arith.constant dense<0.000000e+00> : vector<8x128xf32>
    %12 = tpu.matmul %10, %11, %cst_10 {dimension_numbers = #tpu.dot_dimension_numbers<[1], [1], [0], [0], [0, 0, 1, 0], [], []>} : vector<8x128xbf16>, vector<128x128xbf16>, vector<8x128xf32> -> vector<8x128xf32>
    %c0_11 = arith.constant 0 : index
    %c0_12 = arith.constant 0 : index
    %13 = vector.load %arg5[%c0_11, %c0_12] : memref<8x128xf32, #tpu.memory_space<vmem>>, vector<8x128xf32>
    tpu.vector_store %arg5[%c0_11, %c0_12], %12 {strides = array<i32>} : memref<8x128xf32, #tpu.memory_space<vmem>>, vector<8x128xf32>,
    return
  }
  func.func @transform_0(%arg0: i32) -> (i32, i32) {
    %c0_i32 = arith.constant 0 : i32
    %c0_i32_0 = arith.constant 0 : i32
    return %arg0, %c0_i32 : i32, i32
  }
  func.func @transform_1(%arg0: i32) -> (i32, i32) {
    %c0_i32 = arith.constant 0 : i32
    %c0_i32_0 = arith.constant 0 : i32
    %c0_i32_1 = arith.constant 0 : i32
    return %c0_i32, %c0_i32_0 : i32, i32
  }
  func.func @transform_2(%arg0: i32) -> (i32, i32) {
    %c0_i32 = arith.constant 0 : i32
    %c0_i32_0 = arith.constant 0 : i32
    %c0_i32_1 = arith.constant 0 : i32
    return %c0_i32, %c0_i32_0 : i32, i32
  }
  func.func @transform_3(%arg0: i32) -> (i32, i32) {
    %c0_i32 = arith.constant 0 : i32
    %c0_i32_0 = arith.constant 0 : i32
    %c0_i32_1 = arith.constant 0 : i32
    return %c0_i32, %c0_i32_0 : i32, i32
  }
  func.func @transform_4(%arg0: i32) -> (i32, i32) {
    %c0_i32 = arith.constant 0 : i32
    %c0_i32_0 = arith.constant 0 : i32
    return %arg0, %c0_i32 : i32, i32
  }
}

</mosaic_0001>

<bundles_post_ra>
// kernel: tpu_custom_call.1
= control target key start
LH: loop header
LB: loop body
LE: loop exit
PB: predicated region body
PF: predicated region fallthrough
CT: control target
= control target key end

     0   :  { %9 = vsyncpa [#allocation3], 0  ;;  %s637_s0 = inlined_call_operand.hbm [shape: bf16[8,128], index: 0, kind: input, shape index: {}]   ;;  %s638_s1 = inlined_call_operand.hbm [shape: bf16[128,128], index: 1, kind: input, shape index: {}]   ;;  %s639_s2 = inlined_call_operand.hbm [shape: bf16[128,128], index: 2, kind: input, shape index: {}]   ;;  %s640_s3 = inlined_call_operand.hbm [shape: bf16[128,128], index: 3, kind: input, shape index: {}]   ;;  %s641_s4 = inlined_call_operand.hbm [shape: f32[8,128], index: 4, kind: output, shape index: {}]  }
   0x1   :  { %10 = vsyncpa [#allocation6], 0 }
   0x2   :  { %11 = vsyncpa [#allocation9], 0  ;;  %s28_s17 = sshll.u32 %s638_s1, 4  ;;  %s29_s17 = int_to_ptr.hbm [resolvable:$true] %s28_s17 }
   0x3   :  { %12 = vsyncpa [#allocation4], 0  ;;  %s590_s18 = smov [#allocation5]   ;;  %s18_s22 = sshll.u32 %s637_s0, 4  ;;  %s19_s22 = int_to_ptr.hbm [resolvable:$true] %s18_s22 }
   0x4   :  { %s30_s19 = sshll.u32 %s590_s18, 4  ;;  %s591_s23 = smov 64   ;;  %s31_s19 = int_to_ptr.vmem [resolvable:$true] %s30_s19 }
   0x5   :  { %s592_s24 = smov 4   ;;  %s593_s25 = smov [#allocation2]  }
   0x6   :  { %36 = dma.hbm_to_vmem [thread:$0]  %s29_s17, 1024, %s31_s19, [#allocation6], %s591_s23, %s591_s23, %s592_s24  }
   0x7   :  { %s20_s26 = sshll.u32 %s593_s25, 4  ;;  %s41_s29 = sshll.u32 %s639_s2, 4  ;;  %s21_s26 = int_to_ptr.vmem [resolvable:$true] %s20_s26  ;;  %s42_s29 = int_to_ptr.hbm [resolvable:$true] %s41_s29 }
   0x8   :  { %23 = dma.hbm_to_vmem [thread:$0]  %s19_s22, 64, %s21_s26, [#allocation3]  }
   0x9   :  { %s54_s5 = sshll.u32 %s640_s3, 4  ;;  %s594_s6 = smov [#allocation7]   ;;  %s55_s5 = int_to_ptr.hbm [resolvable:$true] %s54_s5 }
   0xa   :  { %s43_s7 = sshll.u32 %s594_s6, 4  ;;  %s595_s0 = smov [#allocation8]   ;;  %s44_s7 = int_to_ptr.vmem [resolvable:$true] %s43_s7 }
   0xb   :  { %49 = dma.hbm_to_vmem [thread:$0]  %s42_s29, 1024, %s44_s7, [#allocation6], %s591_s23, %s591_s23, %s592_s24  }
   0xc   :  { %s56_s8 = sshll.u32 %s595_s0, 4  ;;  %s57_s8 = int_to_ptr.vmem [resolvable:$true] %s56_s8 }
   0xd   :  { %62 = dma.hbm_to_vmem [thread:$0]  %s55_s5, 1024, %s57_s8, [#allocation9], %s591_s23, %s591_s23, %s592_s24  }
   0xe   :  { %582 = dma.done.wait [#allocation3], 64  }
   0xf   :  { %583 = vsyncadd [#allocation3], 4294967232 }
  0x10   :  { %584 = dma.done.wait [#allocation6], 2048  }
  0x11   :  { %585 = vsyncadd [#allocation6], 4294965248 }
  0x12   :  { %586 = dma.done.wait [#allocation9], 1024  }
  0x13   :  { %587 = vsyncadd [#allocation9], 4294966272  ;;  %v438_v0 = vld [vmem:[#allocation5 + $0x38] sm:$0xff]  ;;  %v437_v1 = vld [vmem:[#allocation5 + $0x30] sm:$0xff]  ;;  %s596_s2 = smov [#allocation10]   ;;  %s323_s11 = sshll.u32 %s641_s4, 4  ;;  %s324_s11 = int_to_ptr.hbm [resolvable:$true] %s323_s11 }
  0x14   :  { %144 = vmatpush.bf16.xpose.msra.mxu0 %v438_v0  ;;  %v436_v2 = vld [vmem:[#allocation5 + $0x28] sm:$0xff]  ;;  %v435_v3 = vld [vmem:[#allocation5 + $0x20] sm:$0xff]  ;;  %v434_v4 = vld [vmem:[#allocation5 + $0x18] sm:$0xff]  ;;  %s321_s3 = sshll.u32 %s596_s2, 4  ;;  %s322_s3 = int_to_ptr.vmem [resolvable:$true] %s321_s3 }
  0x15   :  { %v446_v5 = vld [vmem:[#allocation7 + $0x38] sm:$0xff]  ;;  %v433_v6 = vld [vmem:[#allocation5 + $0x10] sm:$0xff]  ;;  %v432_v8 = vld [vmem:[#allocation5 + $0x8] sm:$0xff] }
  0x16   :  { %223 = vmatpush.bf16.xpose.msra.mxu1 %v446_v5  ;;  %v445_v7 = vld [vmem:[#allocation7 + $0x30] sm:$0xff]  ;;  %v444_v9 = vld [vmem:[#allocation7 + $0x28] sm:$0xff]  ;;  %v431_v10 = vld [vmem:[#allocation5] sm:$0xff] }
  0x17   :  { %v443_v11 = vld [vmem:[#allocation7 + $0x20] sm:$0xff]  ;;  %v79_v12 = vld [vmem:[#allocation2] sm:$0xf]  ;;  %v441_v14 = vld [vmem:[#allocation7 + $0x10] sm:$0xff] }
  0x18   :  { %v442_v13 = vld [vmem:[#allocation7 + $0x18] sm:$0xff]  ;;  %v440_v15 = vld [vmem:[#allocation7 + $0x8] sm:$0xff]  ;;  %v439_v16 = vld [vmem:[#allocation7] sm:$0xff] }
  0x19   :  { %v454_v17 = vld [vmem:[#allocation8 + $0x38] sm:$0xff]  ;;  %v453_v18 = vld [vmem:[#allocation8 + $0x30] sm:$0xff]  ;;  %v452_v19 = vld [vmem:[#allocation8 + $0x28] sm:$0xff] }
  0x1a   :  { %302 = vmatpush.bf16.xpose.msra.mxu2 %v454_v17  ;;  %v451_v20 = vld [vmem:[#allocation8 + $0x20] sm:$0xff]  ;;  %v450_v24 = vld [vmem:[#allocation8 + $0x18] sm:$0xff]  ;;  %v449_v26 = vld [vmem:[#allocation8 + $0x10] sm:$0xff] }
  0x1b   :  { %v448_v27 = vld [vmem:[#allocation8 + $0x8] sm:$0xff]  ;;  %v447_v28 = vld [vmem:[#allocation8] sm:$0xff] }
  0x1c   :  { %145 = vmatpush.bf16.xpose.msra.mxu0 %v437_v1 }
  0x1e   :  { %224 = vmatpush.bf16.xpose.msra.mxu1 %v445_v7 }
  0x22   :  { %303 = vmatpush.bf16.xpose.msra.mxu2 %v453_v18 }
  0x24   :  { %146 = vmatpush.bf16.xpose.msra.mxu0 %v436_v2 }
  0x26   :  { %225 = vmatpush.bf16.xpose.msra.mxu1 %v444_v9 }
  0x2a   :  { %304 = vmatpush.bf16.xpose.msra.mxu2 %v452_v19 }
  0x2c   :  { %147 = vmatpush.bf16.xpose.msra.mxu0 %v435_v3 }
  0x2e   :  { %226 = vmatpush.bf16.xpose.msra.mxu1 %v443_v11 }
  0x32   :  { %305 = vmatpush.bf16.xpose.msra.mxu2 %v451_v20 }
  0x34   :  { %148 = vmatpush.bf16.xpose.msra.mxu0 %v434_v4 }
  0x36   :  { %227 = vmatpush.bf16.xpose.msra.mxu1 %v442_v13 }
  0x3a   :  { %306 = vmatpush.bf16.xpose.msra.mxu2 %v450_v24 }
  0x3c   :  { %149 = vmatpush.bf16.xpose.msra.mxu0 %v433_v6 }
  0x3e   :  { %228 = vmatpush.bf16.xpose.msra.mxu1 %v441_v14 }
  0x42   :  { %307 = vmatpush.bf16.xpose.msra.mxu2 %v449_v26 }
  0x44   :  { %150 = vmatpush.bf16.xpose.msra.mxu0 %v432_v8 }
  0x46   :  { %229 = vmatpush.bf16.xpose.msra.mxu1 %v440_v15 }
  0x4a   :  { %308 = vmatpush.bf16.xpose.msra.mxu2 %v448_v27 }
  0x4c   :  { %151 = vmatpush.bf16.xpose.msra.mxu0 %v431_v10 }
  0x4e   :  { %230 = vmatpush.bf16.xpose.msra.mxu1 %v439_v16 }
  0x52   :  { %309 = vmatpush.bf16.xpose.msra.mxu2 %v447_v28 }
  0x53   :  { %152 = vmatmul.bf16.vlgmr.msra.gmra.mxu0 %v79_v12 }
  0xd0   :  { %v153_v21 = vpop.f32.mrf.mxu0 }
  0xd1   :  { %v157_v22 = vmax.f32 %v153_v21, 0.0 }
  0xd3   :  { %v158_v23 = vpack.c.bf16 %v157_v22, %v157_v22 }
  0xd5   :  { %231 = vmatmul.bf16.vlgmr.msra.gmra.mxu1 %v158_v23 }
  0xd8   :  { %v155_v25 = vpop.f32.mrf.mxu0 }
 0x152   :  { %v232_v29 = vpop.f32.mrf.mxu1 }
 0x153   :  { %v236_v30 = vmax.f32 %v232_v29, 0.0 }
 0x155   :  { %v237_v31 = vpack.c.bf16 %v236_v30, %v236_v30 }
 0x157   :  { %310 = vmatmul.bf16.vlgmr.msra.gmra.mxu2 %v237_v31 }
 0x15a   :  { %v234_v32 = vpop.f32.mrf.mxu1 }
 0x1da   :  { %v311_v33 = vpop.f32.mrf.mxu2 }
 0x1db   :  { %315 = vst [vmem:[#allocation10] sm:$0xff] %v311_v33 }
 0x1dc   :  { %326 = dma.vmem_to_hbm [thread:$0]  %s322_s3, 128, %s324_s11, [#allocation4]  }
 0x1e2   :  { %v313_v34 = vpop.f32.mrf.mxu2 }
 0x1e3   :  { %588 = dma.done.wait [#allocation4], 128  }
 0x1e4   :  { %589 = vsyncadd [#allocation4], 4294967168 }
 0x1e5   :  { %331 = vsyncpa [#allocation3], 1 }
 0x1e6   :  { %332 = vsyncpa [#allocation6], 1 }
 0x1e7   :  { %333 = vsyncpa [#allocation9], 1 }
 0x1e8   :  { %334 = vsyncpa [#allocation4], 1 }

</bundles_post_ra>
